<compile_context>
chip_gen: v5e
topology: v5e:2x2
jax: 0.10.0
libtpu: 0.0.40
codegen_flags: <defaults>
</compile_context>

<pallas_src>
import jax
import jax.numpy as jnp
from jax.experimental import pallas as pl
from jax.experimental.pallas import tpu as pltpu


def _round_up(x, m):
    return (x + m - 1) // m * m


# ----------------------------------------------------------------------------
# Kernel body: two folded (Linear+BN)+ReLU layers + residual add on one row tile
# ----------------------------------------------------------------------------
def _linear_block_kernel(x_ref, w1_ref, t1_ref, w2_ref, t2_ref, o_ref):
    x = x_ref[...]                                   # (tm, Fp) f32, kept for residual
    cdt = w1_ref.dtype                               # compute dtype (bf16)

    # ---- layer 1: folded (Linear + BN) -> ReLU (bf16 intermediate) ----
    y = jnp.dot(x.astype(cdt), w1_ref[...], preferred_element_type=jnp.float32)
    y = jnp.maximum(y + t1_ref[...], 0.0).astype(cdt)
    # Dropout: identity (eval mode)

    # ---- layer 2: folded (Linear + BN) -> ReLU ----
    y = jnp.dot(y, w2_ref[...], preferred_element_type=jnp.float32)
    y = jnp.maximum(y + t2_ref[...], 0.0)

    # ---- residual (f32) ----
    o_ref[...] = (x + y).astype(o_ref.dtype)


# ----------------------------------------------------------------------------
# One-time parameter preparation (outside the per-call hot path)
# ----------------------------------------------------------------------------
def prepare_params(params, *, eps=1e-5, weight_dtype=jnp.bfloat16):
    """Fold bias + eval-mode BN into the transposed weights, pad the feature
    dim (128-aligned, 256-aligned for large F so both MXU dims fill the
    256x256 systolic tile on v6e/v7x), cast to the compute dtype."""
    F = params["w1"].shape[0]
    Fp = _round_up(F, 256) if F >= 1024 else _round_up(F, 128)

    def fold(w, b, gamma, beta, mean, var):
        scale = gamma / jnp.sqrt(var + eps)              # (F,)
        w_f = w.T * scale[None, :]                       # (F_in, F_out), f32
        shift = beta - mean * scale + b * scale          # (F,)
        if Fp != F:
            w_f = jnp.zeros((Fp, Fp), w_f.dtype).at[:F, :F].set(w_f)
            shift = jnp.zeros((Fp,), shift.dtype).at[:F].set(shift)
        return w_f.astype(weight_dtype), shift.reshape(1, Fp).astype(jnp.float32)

    w1, t1 = fold(params["w1"], params["b1"], params["bn1_gamma"],
                  params["bn1_beta"], params["bn1_mean"], params["bn1_var"])
    w2, t2 = fold(params["w2"], params["b2"], params["bn2_gamma"],
                  params["bn2_beta"], params["bn2_mean"], params["bn2_var"])
    return {"w1": w1, "t1": t1, "w2": w2, "t2": t2, "F": F, "Fp": Fp}


def _vmem_budget_bytes():
    """Generation-aware VMEM ceiling: ~85% of capacity on 128 MiB parts
    (v5e/v6e), ~75% on 64 MiB parts (v7x)."""
    try:
        cap = int(pltpu.get_tpu_info().vmem_capacity_bytes)
    except Exception:
        cap = 64 << 20          # conservative fallback
    frac = 0.85 if cap >= (100 << 20) else 0.75
    return int(cap * frac)


def _const_spec(shape):
    """BlockSpec for an operand that is identical across all grid steps.
    Single-buffer it when the Pallas version supports pipeline_mode."""
    index_map = lambda i: (0,) * len(shape)
    try:
        return pl.BlockSpec(shape, index_map, pipeline_mode=pl.Buffered(1)), 1
    except Exception:
        return pl.BlockSpec(shape, index_map), 2


# ----------------------------------------------------------------------------
# Wrapper
# ----------------------------------------------------------------------------
def linear_block_forward(x, folded, *, tm=256):
    """x: (N, F) float32. folded: output of prepare_params."""
    N, F = x.shape
    Fp = folded["Fp"]
    assert folded["F"] == F, "params prepared for a different linear_size"

    # Choose the row tile: default 256 (MXU-filling), collapse tiny batches to
    # a single step, and shrink tm so it (almost) divides N to minimize pad.
    tm = max(16, min(tm, _round_up(N, 16)))
    steps = -(-N // tm)
    tm = _round_up(-(-N // steps), 16)
    Np = steps * tm

    # Pad only when needed (the materialized pad re-reads all of x in HBM).
    xp = x
    if Np != N or Fp != F:
        xp = jnp.zeros((Np, Fp), x.dtype).at[:N, :F].set(x)

    row_spec = pl.BlockSpec((tm, Fp), lambda i: (i, 0))
    w_spec, wbuf = _const_spec((Fp, Fp))      # constant across the grid
    t_spec, _ = _const_spec((1, Fp))

    # VMEM budget: x/out tiles (f32, double-buffered pipeline) + folded weights
    # and shifts (wbuf buffers) + in-kernel temporaries (f32 dot results +
    # bf16 copies of x and the layer-1 output).
    wbytes = jnp.dtype(folded["w1"].dtype).itemsize
    est = (2 * (tm * Fp * 4) * 2                       # x + out pipeline buffers
           + wbuf * 2 * (Fp * Fp * wbytes + Fp * 4)    # two weights + two shifts
           + 3 * tm * Fp * 4)                          # in-kernel temporaries
    vmem_limit = min(int(est * 1.25) + (4 << 20), _vmem_budget_bytes())

    cost = pl.CostEstimate(
        flops=4 * Np * Fp * Fp,                               # two (Np,Fp)x(Fp,Fp) matmuls
        transcendentals=0,
        bytes_accessed=8 * Np * Fp + 2 * Fp * Fp * wbytes + 8 * Fp,
    )

    out = pl.pallas_call(
        _linear_block_kernel,
        out_shape=jax.ShapeDtypeStruct((Np, Fp), x.dtype),
        grid_spec=pltpu.PrefetchScalarGridSpec(
            num_scalar_prefetch=0,
            grid=(Np // tm,),
            in_specs=[row_spec,            # x tile
                      w_spec, t_spec,      # folded W1, shift1
                      w_spec, t_spec],     # folded W2, shift2
            out_specs=row_spec,
        ),
        compiler_params=pltpu.CompilerParams(
            dimension_semantics=("parallel",),
            vmem_limit_bytes=vmem_limit),
        cost_estimate=cost,
    )(xp, folded["w1"], folded["t1"], folded["w2"], folded["t2"])

    if Np != N or Fp != F:
        out = out[:N, :F]
    return out


# ----------------------------------------------------------------------------
# Parameter init + pure-JAX reference (eval-mode PyTorch forward)
# ----------------------------------------------------------------------------
def init_params(key, linear_size):
    F = linear_size
    k1, k2, k3, k4, k5, k6 = jax.random.split(key, 6)
    bound = 1.0 / jnp.sqrt(F)
    return {
        # nn.Linear: weight (out, in), bias (out,)
        "w1": jax.random.uniform(k1, (F, F), jnp.float32, -bound, bound),
        "b1": jax.random.uniform(k2, (F,), jnp.float32, -bound, bound),
        "w2": jax.random.uniform(k3, (F, F), jnp.float32, -bound, bound),
        "b2": jax.random.uniform(k4, (F,), jnp.float32, -bound, bound),
        # BatchNorm1d params / running stats (gamma perturbed so the affine
        # path is actually exercised)
        "bn1_gamma": 1.0 + 0.1 * jax.random.normal(k5, (F,), jnp.float32),
        "bn1_beta": jnp.zeros((F,), jnp.float32),
        "bn1_mean": jnp.zeros((F,), jnp.float32),
        "bn1_var": jnp.ones((F,), jnp.float32),
        "bn2_gamma": 1.0 + 0.1 * jax.random.normal(k6, (F,), jnp.float32),
        "bn2_beta": jnp.zeros((F,), jnp.float32),
        "bn2_mean": jnp.zeros((F,), jnp.float32),
        "bn2_var": jnp.ones((F,), jnp.float32),
    }


def reference_forward(x, params, eps=1e-5):
    def bn(y, g, b, m, v):
        return (y - m) / jnp.sqrt(v + eps) * g + b
    y = x @ params["w1"].T + params["b1"]
    y = bn(y, params["bn1_gamma"], params["bn1_beta"],
           params["bn1_mean"], params["bn1_var"])
    y = jnp.maximum(y, 0.0)
    y = y @ params["w2"].T + params["b2"]
    y = bn(y, params["bn2_gamma"], params["bn2_beta"],
           params["bn2_mean"], params["bn2_var"])
    y = jnp.maximum(y, 0.0)
    return x + y


if __name__ == "__main__":
    N, F = 16, 128          # batch=16, linear_size=128
    key = jax.random.PRNGKey(0)
    kx, kp = jax.random.split(key)
    x = jax.random.normal(kx, (N, F), jnp.float32)
    params = init_params(kp, F)

    folded = prepare_params(params)            # one-time prep (bf16 folded weights)
    out = linear_block_forward(x, folded)
    out = jax.block_until_ready(out)

    ref = reference_forward(x, params)
    assert out.shape == (N, F)
    # bf16 weights/operands in the two matmuls -> tolerance loosened vs f32 ref.
    assert jnp.allclose(out, ref, atol=5e-2, rtol=5e-2), "mismatch vs reference"
    print("KERNEL_OK")
</pallas_src>

<mosaic_0001>
module attributes {stable_mosaic.version = 11 : i64} {
  func.func @_linear_block_kernel(%arg0: i32, %arg1: memref<16x128xf32, #tpu.memory_space<vmem>>, %arg2: memref<128x128xbf16, #tpu.memory_space<vmem>>, %arg3: memref<1x128xf32, #tpu.memory_space<vmem>>, %arg4: memref<128x128xbf16, #tpu.memory_space<vmem>>, %arg5: memref<1x128xf32, #tpu.memory_space<vmem>>, %arg6: memref<16x128xf32, #tpu.memory_space<vmem>>) attributes {dimension_semantics = [#tpu.dimension_semantics<parallel>], iteration_bounds = array<i64: 1>, scalar_prefetch = 0 : i64, scratch_operands = 0 : i64, tpu.core_type = #tpu.core_type<tc>, window_params = [{transform_indices = @transform_0, window_bounds = array<i64: 16, 128>}, {pipeline_mode = #tpu.pipeline_mode<synchronous>, transform_indices = @transform_1, window_bounds = array<i64: 128, 128>}, {pipeline_mode = #tpu.pipeline_mode<synchronous>, transform_indices = @transform_2, window_bounds = array<i64: 1, 128>}, {pipeline_mode = #tpu.pipeline_mode<synchronous>, transform_indices = @transform_3, window_bounds = array<i64: 128, 128>}, {pipeline_mode = #tpu.pipeline_mode<synchronous>, transform_indices = @transform_4, window_bounds = array<i64: 1, 128>}, {transform_indices = @transform_5, window_bounds = array<i64: 16, 128>}]} {
    %c0 = arith.constant 0 : index
    %c0_0 = arith.constant 0 : index
    %0 = vector.load %arg1[%c0, %c0_0] : memref<16x128xf32, #tpu.memory_space<vmem>>, vector<16x128xf32>
    %1 = arith.truncf %0 : vector<16x128xf32> to vector<16x128xbf16>
    %c0_1 = arith.constant 0 : index
    %c0_2 = arith.constant 0 : index
    %2 = vector.load %arg2[%c0_1, %c0_2] : memref<128x128xbf16, #tpu.memory_space<vmem>>, vector<128x128xbf16>
    %cst = arith.constant dense<0.000000e+00> : vector<16x128xf32>
    %3 = tpu.matmul %1, %2, %cst {dimension_numbers = #tpu.dot_dimension_numbers<[1], [0], [0], [1], [0, 0, 1, 1], [], []>} : vector<16x128xbf16>, vector<128x128xbf16>, vector<16x128xf32> -> vector<16x128xf32>
    %c0_3 = arith.constant 0 : index
    %c0_4 = arith.constant 0 : index
    %4 = vector.load %arg3[%c0_3, %c0_4] : memref<1x128xf32, #tpu.memory_space<vmem>>, vector<1x128xf32>
    %5 = vector.broadcast %4 : vector<1x128xf32> to vector<16x128xf32>
    %6 = arith.addf %3, %5 : vector<16x128xf32>
    %cst_5 = arith.constant 0.000000e+00 : f32
    %7 = vector.broadcast %cst_5 : f32 to vector<16x128xf32>
    %8 = arith.maximumf %6, %7 : vector<16x128xf32>
    %9 = arith.truncf %8 : vector<16x128xf32> to vector<16x128xbf16>
    %c0_6 = arith.constant 0 : index
    %c0_7 = arith.constant 0 : index
    %10 = vector.load %arg4[%c0_6, %c0_7] : memref<128x128xbf16, #tpu.memory_space<vmem>>, vector<128x128xbf16>
    %cst_8 = arith.constant dense<0.000000e+00> : vector<16x128xf32>
    %11 = tpu.matmul %9, %10, %cst_8 {dimension_numbers = #tpu.dot_dimension_numbers<[1], [0], [0], [1], [0, 0, 1, 1], [], []>} : vector<16x128xbf16>, vector<128x128xbf16>, vector<16x128xf32> -> vector<16x128xf32>
    %c0_9 = arith.constant 0 : index
    %c0_10 = arith.constant 0 : index
    %12 = vector.load %arg5[%c0_9, %c0_10] : memref<1x128xf32, #tpu.memory_space<vmem>>, vector<1x128xf32>
    %13 = vector.broadcast %12 : vector<1x128xf32> to vector<16x128xf32>
    %14 = arith.addf %11, %13 : vector<16x128xf32>
    %cst_11 = arith.constant 0.000000e+00 : f32
    %15 = vector.broadcast %cst_11 : f32 to vector<16x128xf32>
    %16 = arith.maximumf %14, %15 : vector<16x128xf32>
    %17 = arith.addf %0, %16 : vector<16x128xf32>
    %c0_12 = arith.constant 0 : index
    %c0_13 = arith.constant 0 : index
    %18 = vector.load %arg6[%c0_12, %c0_13] : memref<16x128xf32, #tpu.memory_space<vmem>>, vector<16x128xf32>
    tpu.vector_store %arg6[%c0_12, %c0_13], %17 {strides = array<i32>} : memref<16x128xf32, #tpu.memory_space<vmem>>, vector<16x128xf32>,
    return
  }
  func.func @transform_0(%arg0: i32) -> (i32, i32) {
    %c0_i32 = arith.constant 0 : i32
    %c0_i32_0 = arith.constant 0 : i32
    return %arg0, %c0_i32 : i32, i32
  }
  func.func @transform_1(%arg0: i32) -> (i32, i32) {
    %c0_i32 = arith.constant 0 : i32
    %c0_i32_0 = arith.constant 0 : i32
    %c0_i32_1 = arith.constant 0 : i32
    return %c0_i32, %c0_i32_0 : i32, i32
  }
  func.func @transform_2(%arg0: i32) -> (i32, i32) {
    %c0_i32 = arith.constant 0 : i32
    %c0_i32_0 = arith.constant 0 : i32
    %c0_i32_1 = arith.constant 0 : i32
    return %c0_i32, %c0_i32_0 : i32, i32
  }
  func.func @transform_3(%arg0: i32) -> (i32, i32) {
    %c0_i32 = arith.constant 0 : i32
    %c0_i32_0 = arith.constant 0 : i32
    %c0_i32_1 = arith.constant 0 : i32
    return %c0_i32, %c0_i32_0 : i32, i32
  }
  func.func @transform_4(%arg0: i32) -> (i32, i32) {
    %c0_i32 = arith.constant 0 : i32
    %c0_i32_0 = arith.constant 0 : i32
    %c0_i32_1 = arith.constant 0 : i32
    return %c0_i32, %c0_i32_0 : i32, i32
  }
  func.func @transform_5(%arg0: i32) -> (i32, i32) {
    %c0_i32 = arith.constant 0 : i32
    %c0_i32_0 = arith.constant 0 : i32
    return %arg0, %c0_i32 : i32, i32
  }
}

</mosaic_0001>

<bundles_post_ra>
// kernel: tpu_custom_call.1
= control target key start
LH: loop header
LB: loop body
LE: loop exit
PB: predicated region body
PF: predicated region fallthrough
CT: control target
= control target key end

     0   :  { %10 = vsyncpa [#allocation3], 0  ;;  %s518_s0 = inlined_call_operand.hbm [shape: f32[16,128], index: 0, kind: input, shape index: {}]   ;;  %s519_s1 = inlined_call_operand.hbm [shape: bf16[128,128], index: 1, kind: input, shape index: {}]   ;;  %s520_s2 = inlined_call_operand.vmem [shape: f32[1,128], index: 2, kind: input, shape index: {}]   ;;  %s521_s3 = inlined_call_operand.hbm [shape: bf16[128,128], index: 3, kind: input, shape index: {}]   ;;  %s522_s4 = inlined_call_operand.vmem [shape: f32[1,128], index: 4, kind: input, shape index: {}]   ;;  %s523_s5 = inlined_call_operand.hbm [shape: f32[16,128], index: 5, kind: output, shape index: {}]  }
   0x1   :  { %11 = vsyncpa [#allocation6], 0  ;;  %s30_s20 = sshll.u32 %s519_s1, 4  ;;  %s31_s20 = int_to_ptr.hbm [resolvable:$true] %s30_s20 }
   0x2   :  { %12 = vsyncpa [#allocation4], 0  ;;  %s456_s21 = smov [#allocation5]   ;;  %s17_s25 = sshll.u32 %s518_s0, 4  ;;  %s18_s25 = int_to_ptr.hbm [resolvable:$true] %s17_s25 }
   0x3   :  { %s32_s22 = sshll.u32 %s456_s21, 4  ;;  %s457_s26 = smov 64   ;;  %s33_s22 = int_to_ptr.vmem [resolvable:$true] %s32_s22 }
   0x4   :  { %s458_s27 = smov 4   ;;  %s459_s28 = smov [#allocation2]  }
   0x5   :  { %38 = dma.hbm_to_vmem [thread:$0]  %s31_s20, 1024, %s33_s22, [#allocation6], %s457_s26, %s457_s26, %s458_s27  }
   0x6   :  { %s19_s29 = sshll.u32 %s459_s28, 4  ;;  %s460_s30 = smov 128   ;;  %s20_s29 = int_to_ptr.vmem [resolvable:$true] %s19_s29 }
   0x7   :  { %s461_s6 = smov 8   ;;  %s45_s8 = sshll.u32 %s521_s3, 4  ;;  %s46_s8 = int_to_ptr.hbm [resolvable:$true] %s45_s8 }
   0x8   :  { %25 = dma.hbm_to_vmem [thread:$0]  %s18_s25, 256, %s20_s29, [#allocation3], %s460_s30, %s460_s30, %s461_s6  }
   0x9   :  { %s462_s9 = smov [#allocation7]  }
   0xa   :  { %s47_s0 = sshll.u32 %s462_s9, 4  ;;  %s48_s0 = int_to_ptr.vmem [resolvable:$true] %s47_s0 }
   0xb   :  { %53 = dma.hbm_to_vmem [thread:$0]  %s46_s8, 1024, %s48_s0, [#allocation6], %s457_s26, %s457_s26, %s458_s27  }
   0xc   :  { %450 = dma.done.wait [#allocation3], 256  }
   0xd   :  { %451 = vsyncadd [#allocation3], 4294967040 }
   0xe   :  { %452 = dma.done.wait [#allocation6], 2048  }
   0xf   :  { %453 = vsyncadd [#allocation6], 4294965248  ;;  %v335_v0 = vld [vmem:[#allocation5 + $0x38] sm:$0xff]  ;;  %v334_v1 = vld [vmem:[#allocation5 + $0x30] sm:$0xff]  ;;  %s463_s13 = smov [#allocation8]   ;;  %s250_s16 = sshll.u32 %s523_s5, 4  ;;  %s251_s16 = int_to_ptr.hbm [resolvable:$true] %s250_s16 }
  0x10   :  { %139 = vmatpush.bf16.msra.mxu0 %v335_v0  ;;  %v343_v2 = vld [vmem:[#allocation7 + $0x38] sm:$0xff]  ;;  %v342_v3 = vld [vmem:[#allocation7 + $0x30] sm:$0xff]  ;;  %v333_v4 = vld [vmem:[#allocation5 + $0x28] sm:$0xff] }
  0x11   :  { %224 = vmatpush.bf16.msra.mxu1 %v343_v2  ;;  %v341_v5 = vld [vmem:[#allocation7 + $0x28] sm:$0xff]  ;;  %v332_v6 = vld [vmem:[#allocation5 + $0x20] sm:$0xff]  ;;  %v331_v8 = vld [vmem:[#allocation5 + $0x18] sm:$0xff] }
  0x12   :  { %v340_v7 = vld [vmem:[#allocation7 + $0x20] sm:$0xff]  ;;  %v330_v9 = vld [vmem:[#allocation5 + $0x10] sm:$0xff]  ;;  %v329_v10 = vld [vmem:[#allocation5 + $0x8] sm:$0xff] }
  0x13   :  { %v328_v11 = vld [vmem:[#allocation5] sm:$0xff]  ;;  %v68_v12 = vld [vmem:[#allocation2] sm:$0xff]  ;;  %v69_v13 = vld [vmem:[#allocation2 + $0x8] sm:$0xff] }
  0x14   :  { %140 = vmatpush.bf16.msra.mxu0 %v334_v1  ;;  %v70_v14 = vpack.c.bf16 %v69_v13, %v68_v12  ;;  %v339_v15 = vld [vmem:[#allocation7 + $0x18] sm:$0xff]  ;;  %v338_v16 = vld [vmem:[#allocation7 + $0x10] sm:$0xff]  ;;  %v337_v17 = vld [vmem:[#allocation7 + $0x8] sm:$0xff] }
  0x15   :  { %225 = vmatpush.bf16.msra.mxu1 %v342_v3  ;;  %v336_v18 = vld [vmem:[#allocation7] sm:$0xff]  ;;  %v352_v20 = vld [vmem:[%s520_s2] ss:$0 sm:$0xff]  ;;  %s248_s2 = sshll.u32 %s463_s13, 4  ;;  %s249_s2 = int_to_ptr.vmem [resolvable:$true] %s248_s2 }
  0x16   :  { %v353_v27 = vld [vmem:[%s522_s4] ss:$0 sm:$0xff] }
  0x18   :  { %141 = vmatpush.bf16.msra.mxu0 %v333_v4 }
  0x19   :  { %226 = vmatpush.bf16.msra.mxu1 %v341_v5 }
  0x1c   :  { %142 = vmatpush.bf16.msra.mxu0 %v332_v6 }
  0x1d   :  { %227 = vmatpush.bf16.msra.mxu1 %v340_v7 }
  0x20   :  { %143 = vmatpush.bf16.msra.mxu0 %v331_v8 }
  0x21   :  { %228 = vmatpush.bf16.msra.mxu1 %v339_v15 }
  0x24   :  { %144 = vmatpush.bf16.msra.mxu0 %v330_v9 }
  0x25   :  { %229 = vmatpush.bf16.msra.mxu1 %v338_v16 }
  0x28   :  { %145 = vmatpush.bf16.msra.mxu0 %v329_v10 }
  0x29   :  { %230 = vmatpush.bf16.msra.mxu1 %v337_v17 }
  0x2c   :  { %146 = vmatpush.bf16.msra.mxu0 %v328_v11 }
  0x2d   :  { %231 = vmatpush.bf16.msra.mxu1 %v336_v18 }
  0x2f   :  { %147 = vmatmul.bf16.vlgmr.msra.gmra.mxu0 %v70_v14 }
  0xac   :  { %v148_v19 = vpop.f32.mrf.mxu0 }
  0xad   :  { %v149_v21 = vadd.f32 %v352_v20, %v148_v19 }
  0xaf   :  { %v153_v24 = vmax.f32 %v149_v21, 0.0 }
  0xb4   :  { %v150_v22 = vpop.f32.mrf.mxu0 }
  0xb5   :  { %v151_v23 = vadd.f32 %v352_v20, %v150_v22 }
  0xb7   :  { %v154_v25 = vmax.f32 %v151_v23, 0.0 }
  0xb9   :  { %v155_v26 = vpack.c.bf16 %v154_v25, %v153_v24 }
  0xbb   :  { %232 = vmatmul.bf16.vlgmr.msra.gmra.mxu1 %v155_v26 }
 0x138   :  { %v233_v28 = vpop.f32.mrf.mxu1 }
 0x139   :  { %v234_v29 = vadd.f32 %v353_v27, %v233_v28 }
 0x13b   :  { %v238_v30 = vmax.f32 %v234_v29, 0.0 }
 0x13d   :  { %v240_v31 = vadd.f32 %v238_v30, %v68_v12 }
 0x13f   :  { %242 = vst [vmem:[#allocation8] sm:$0xff] %v240_v31 }
 0x140   :  { %v235_v32 = vpop.f32.mrf.mxu1 }
 0x141   :  { %v236_v33 = vadd.f32 %v353_v27, %v235_v32 }
 0x143   :  { %v239_v34 = vmax.f32 %v236_v33, 0.0 }
 0x145   :  { %v241_v35 = vadd.f32 %v239_v34, %v69_v13 }
 0x147   :  { %243 = vst [vmem:[#allocation8 + $0x8] sm:$0xff] %v241_v35 }
 0x148   :  { %256 = dma.vmem_to_hbm [thread:$0]  %s249_s2, 256, %s251_s16, [#allocation4], %s460_s30, %s460_s30, %s461_s6  }
 0x149   :  { %454 = dma.done.wait [#allocation4], 256  }
 0x14a   :  { %455 = vsyncadd [#allocation4], 4294967040 }
 0x14b   :  { %261 = vsyncpa [#allocation3], 1 }
 0x14c   :  { %262 = vsyncpa [#allocation6], 1 }
 0x14d   :  { %263 = vsyncpa [#allocation4], 1 }

</bundles_post_ra>
